<compile_context>
chip_gen: v6e
topology: v6e:2x2x1
jax: 0.10.0
libtpu: 0.0.40
codegen_flags: <defaults>
</compile_context>

<pallas_src>
import jax
import jax.numpy as jnp
from jax.experimental import pallas as pl
from jax.experimental.pallas import tpu as pltpu

LEAKY_SLOPE = 0.2
BN_EPS = 1e-5


def _leaky_relu(x):
    # max(x, a*x) == LeakyReLU(a) for 0 < a < 1; 2 VPU ops vs cmp+select+mul.
    return jnp.maximum(x, LEAKY_SLOPE * x)


def _hidden(x_ref, w1_ref, b1_ref, w2_ref):
    """h2 = W2 @ LeakyReLU(W1 @ x + b1), channels-major, f32 result."""
    x = x_ref[...].astype(w1_ref.dtype)                       # (Cin, TM) -> bf16 in-kernel
    h1 = jnp.dot(w1_ref[...], x, preferred_element_type=jnp.float32)
    h1 = _leaky_relu(h1 + b1_ref[...])                        # (ndf, TM) f32
    h2 = jnp.dot(w2_ref[...], h1.astype(w2_ref.dtype),
                 preferred_element_type=jnp.float32)          # (2ndf, TM) f32
    return h2


def _stats_kernel(x_ref, w1_ref, b1_ref, w2_ref, sum_ref, sq_ref):
    """Pass 1: per-core partial per-channel sum / sum-of-squares of h2.

    Grid = (core_split, batch, tiles_per_core); the accumulator blocks are
    indexed by the leading 'parallel' axis only, so each core owns its own
    partial sums (no cross-core race).  Padded pixel columns are included here
    and removed analytically in the wrapper finalize.
    """
    first = jnp.logical_and(pl.program_id(1) == 0, pl.program_id(2) == 0)

    @pl.when(first)
    def _():
        sum_ref[...] = jnp.zeros_like(sum_ref)
        sq_ref[...] = jnp.zeros_like(sq_ref)

    h2 = _hidden(x_ref, w1_ref, b1_ref, w2_ref)               # (2ndf, TM) f32
    sum_ref[...] += jnp.sum(h2, axis=-1, keepdims=True)
    sq_ref[...] += jnp.sum(h2 * h2, axis=-1, keepdims=True)


def _apply_kernel(x_ref, w1_ref, b1_ref, w2_ref, scale_ref, shift_ref, w3_ref,
                  o_ref):
    """Pass 2: recompute h2, normalize (folded BN), LeakyReLU, project."""
    h2 = _hidden(x_ref, w1_ref, b1_ref, w2_ref)               # (2ndf, TM) f32
    h2 = h2.astype(scale_ref.dtype)      # f32 on v5-, bf16 on v6e/v7x
    h3 = _leaky_relu(h2 * scale_ref[...] + shift_ref[...])
    out = jnp.dot(w3_ref[...], h3.astype(w3_ref.dtype),
                  preferred_element_type=jnp.float32)         # (1, TM)
    o_ref[...] = out.astype(o_ref.dtype)


def _choose_tiling(hw):
    """Pick (tm, hw_pad, num_t, nsplit) for the pixel axis.

    hw is padded up to a multiple of tm*nsplit (not just 128) so large tiles
    stay usable for non-power-of-two images; waste is capped at ~12.5%.
    """
    hw128 = ((hw + 127) // 128) * 128
    if hw128 <= 4096:
        # Small image: a single lane-dense tile per batch element.
        return hw128, hw128, 1, 1
    nsplit = 2  # shard the stats pass across both TensorCores on v7x
    for tm in (4096, 2048, 1024, 512, 256, 128):
        unit = tm * nsplit
        hw_pad = ((hw + unit - 1) // unit) * unit
        if (hw_pad - hw) * 8 <= hw:          # padded waste <= 12.5%
            return tm, hw_pad, hw_pad // tm, nsplit
    hw_pad = ((hw + 255) // 256) * 256       # unreachable fallback
    return 128, hw_pad, hw_pad // 128, nsplit


def _default_elt_dtype():
    """bf16 elementwise BN/LeakyReLU only on chips with a bf16 VPU (v6e+)."""
    try:
        kind = jax.devices()[0].device_kind.lower()
    except Exception:
        return jnp.float32
    if any(tag in kind for tag in ("v2", "v3", "v4", "v5")):
        return jnp.float32
    return jnp.bfloat16


def pixel_discriminator(x_nchw, params, *, elt_dtype=None):
    """x_nchw: (N, Cin, H, W) float32.  Returns (N, 1, H, W) float32."""
    w1t, b1, w2t, gamma, beta, w3t = params
    n, c, h, w = x_nchw.shape
    hw = h * w
    ndf = w1t.shape[0]
    ndf2 = w2t.shape[0]

    if elt_dtype is None:
        elt_dtype = _default_elt_dtype()

    tm, hw_pad, num_t, nsplit = _choose_tiling(hw)
    tpc = num_t // nsplit                      # pixel tiles per core (pass 1)

    # NCHW -> (N, C, H*W): channels on sublanes, pixels on lanes.  x stays f32
    # (cast to bf16 inside the kernel); pad (if any) is the only HBM rewrite.
    x = x_nchw.reshape(n, c, hw).astype(jnp.float32)
    if hw_pad != hw:
        x = jnp.pad(x, ((0, 0), (0, 0), (0, hw_pad - hw)))

    w1b = w1t.astype(jnp.bfloat16)
    w2b = w2t.astype(jnp.bfloat16)
    w3b = w3t.astype(jnp.bfloat16)
    b1f = b1.astype(jnp.float32)
    gammaf = gamma.astype(jnp.float32)
    betaf = beta.astype(jnp.float32)

    # ---- Pass 1: per-core partial batch statistics of h2 -------------------
    const3 = lambda p, i, j: (0, 0)
    acc_spec = pl.BlockSpec((None, ndf2, 1), lambda p, i, j: (p, 0, 0))
    psum, psq = pl.pallas_call(
        _stats_kernel,
        grid=(nsplit, n, tpc),
        in_specs=[
            pl.BlockSpec((None, c, tm), lambda p, i, j: (i, 0, p * tpc + j)),
            pl.BlockSpec((ndf, c), const3),
            pl.BlockSpec((ndf, 1), const3),
            pl.BlockSpec((ndf2, ndf), const3),
        ],
        out_specs=(acc_spec, acc_spec),
        out_shape=(jax.ShapeDtypeStruct((nsplit, ndf2, 1), jnp.float32),
                   jax.ShapeDtypeStruct((nsplit, ndf2, 1), jnp.float32)),
        compiler_params=pltpu.CompilerParams(
            dimension_semantics=("parallel", "arbitrary", "arbitrary"),
            vmem_limit_bytes=32 * 1024 * 1024),
    )(x, w1b, b1f, w2b)

    # ---- Finalize BN stats (tiny, plain JAX): combine cores, remove pad ----
    total_sum = jnp.sum(psum, axis=0)                         # (2ndf, 1)
    total_sq = jnp.sum(psq, axis=0)
    n_pad = n * (hw_pad - hw)
    if n_pad > 0:
        # Every zero-padded pixel column contributes the same constant
        # h2_pad = W2_bf16 @ leaky(b1) (same bf16 rounding path as the kernel).
        h1p = jnp.maximum(b1f, LEAKY_SLOPE * b1f)             # (ndf, 1)
        h2p = jnp.dot(w2b, h1p.astype(jnp.bfloat16),
                      preferred_element_type=jnp.float32)     # (2ndf, 1)
        total_sum = total_sum - n_pad * h2p
        total_sq = total_sq - n_pad * (h2p * h2p)
    m_total = float(n * hw)
    mean = total_sum / m_total
    var = jnp.maximum(total_sq / m_total - mean * mean, 0.0)  # clamp >= 0
    scale = gammaf * jax.lax.rsqrt(var + BN_EPS)
    shift = betaf - mean * scale
    scale = scale.astype(elt_dtype)
    shift = shift.astype(elt_dtype)

    # ---- Pass 2: normalize + LeakyReLU + 1x1 projection (lane-dense out) ---
    const2 = lambda i, j: (0, 0)
    out = pl.pallas_call(
        _apply_kernel,
        grid=(n, num_t),
        in_specs=[
            pl.BlockSpec((None, c, tm), lambda i, j: (i, 0, j)),
            pl.BlockSpec((ndf, c), const2),
            pl.BlockSpec((ndf, 1), const2),
            pl.BlockSpec((ndf2, ndf), const2),
            pl.BlockSpec((ndf2, 1), const2),
            pl.BlockSpec((ndf2, 1), const2),
            pl.BlockSpec((1, ndf2), const2),
        ],
        out_specs=pl.BlockSpec((None, 1, tm), lambda i, j: (i, 0, j)),
        out_shape=jax.ShapeDtypeStruct((n, 1, hw_pad), jnp.float32),
        compiler_params=pltpu.CompilerParams(
            dimension_semantics=("parallel", "parallel"),
            vmem_limit_bytes=32 * 1024 * 1024),
    )(x, w1b, b1f, w2b, scale, shift, w3b)

    return out[:, :, :hw].reshape(n, 1, h, w)


def init_params(key, input_nc, ndf):
    """Deterministic synthetic parameters in channels-major layout.

    PyTorch Conv2d 1x1 weights are (Cout, Cin, 1, 1); we store the equivalent
    (Cout, Cin) matrices.  Conv2/Conv3 have no bias (BatchNorm norm layer);
    BatchNorm affine params follow PyTorch defaults (gamma=1, beta=0)."""
    k1, k2, k3, k4 = jax.random.split(key, 4)
    w1t = jax.random.normal(k1, (ndf, input_nc), jnp.float32) * 0.1
    b1 = jax.random.normal(k2, (ndf, 1), jnp.float32) * 0.1
    w2t = jax.random.normal(k3, (2 * ndf, ndf), jnp.float32) * 0.05
    gamma = jnp.ones((2 * ndf, 1), jnp.float32)
    beta = jnp.zeros((2 * ndf, 1), jnp.float32)
    w3t = jax.random.normal(k4, (1, 2 * ndf), jnp.float32) * 0.05
    return (w1t, b1, w2t, gamma, beta, w3t)


def _reference(x_nchw, params):
    """Pure-JAX reference (bf16 matmuls, f32 acc, f32 BN elementwise)."""
    w1t, b1, w2t, gamma, beta, w3t = params
    n, c, h, w = x_nchw.shape
    x = x_nchw.reshape(n, c, h * w).astype(jnp.bfloat16)
    h1 = jnp.einsum("oc,bcp->bop", w1t.astype(jnp.bfloat16), x,
                    preferred_element_type=jnp.float32) + b1[None]
    h1 = jnp.where(h1 > 0, h1, LEAKY_SLOPE * h1)
    h2 = jnp.einsum("oc,bcp->bop", w2t.astype(jnp.bfloat16),
                    h1.astype(jnp.bfloat16),
                    preferred_element_type=jnp.float32)
    mean = jnp.mean(h2, axis=(0, 2), keepdims=True)
    var = jnp.mean((h2 - mean) ** 2, axis=(0, 2), keepdims=True)
    h2n = (h2 - mean) * jax.lax.rsqrt(var + BN_EPS) * gamma[None] + beta[None]
    h3 = jnp.where(h2n > 0, h2n, LEAKY_SLOPE * h2n)
    out = jnp.einsum("oc,bcp->bop", w3t.astype(jnp.bfloat16),
                     h3.astype(jnp.bfloat16),
                     preferred_element_type=jnp.float32)
    return out.reshape(n, 1, h, w)


if __name__ == "__main__":
    key = jax.random.PRNGKey(0)
    kx, kp = jax.random.split(key)

    N, Cin, H, W = 2, 4, 16, 16   # small demo shapes
    NDF = 64                      # default ndf

    x = jax.random.normal(kx, (N, Cin, H, W), jnp.float32)
    params = init_params(kp, Cin, NDF)

    out = jax.block_until_ready(pixel_discriminator(x, params))
    ref = jax.block_until_ready(_reference(x, params))

    assert out.shape == (N, 1, H, W)
    assert bool(jnp.all(jnp.isfinite(out)))
    assert jnp.allclose(out, ref, atol=1e-2, rtol=1e-2), "mismatch vs reference"

    print("KERNEL_OK")
</pallas_src>

<mosaic_0001>
module attributes {stable_mosaic.version = 11 : i64} {
  func.func @_stats_kernel(%arg0: i32, %arg1: i32, %arg2: i32, %arg3: memref<1x4x256xf32, #tpu.memory_space<vmem>>, %arg4: memref<64x4xbf16, #tpu.memory_space<vmem>>, %arg5: memref<64x1xf32, #tpu.memory_space<vmem>>, %arg6: memref<128x64xbf16, #tpu.memory_space<vmem>>, %arg7: memref<1x128x1xf32, #tpu.memory_space<vmem>>, %arg8: memref<1x128x1xf32, #tpu.memory_space<vmem>>) attributes {dimension_semantics = [#tpu.dimension_semantics<parallel>, #tpu.dimension_semantics<arbitrary>, #tpu.dimension_semantics<arbitrary>], iteration_bounds = array<i64: 1, 2, 1>, scalar_prefetch = 0 : i64, scratch_operands = 0 : i64, tpu.core_type = #tpu.core_type<tc>, window_params = [{transform_indices = @transform_0, window_bounds = array<i64: 1, 4, 256>}, {pipeline_mode = #tpu.pipeline_mode<synchronous>, transform_indices = @transform_1, window_bounds = array<i64: 64, 4>}, {pipeline_mode = #tpu.pipeline_mode<synchronous>, transform_indices = @transform_2, window_bounds = array<i64: 64, 1>}, {pipeline_mode = #tpu.pipeline_mode<synchronous>, transform_indices = @transform_3, window_bounds = array<i64: 128, 64>}, {transform_indices = @transform_4, window_bounds = array<i64: 1, 128, 1>}, {transform_indices = @transform_5, window_bounds = array<i64: 1, 128, 1>}]} {
    %c0_i32 = arith.constant 0 : i32
    %0 = arith.cmpi eq, %arg1, %c0_i32 : i32
    %c0_i32_0 = arith.constant 0 : i32
    %1 = arith.cmpi eq, %arg2, %c0_i32_0 : i32
    %2 = arith.andi %0, %1 : i1
    %3 = arith.extui %2 : i1 to i32
    %c0_i32_1 = arith.constant 0 : i32
    %4 = arith.cmpi ne, %3, %c0_i32_1 : i32
    scf.if %4 {
      %cst_26 = arith.constant 0.000000e+00 : f32
      %36 = vector.broadcast %cst_26 : f32 to vector<128x1xf32>
      %c0_27 = arith.constant 0 : index
      %c0_28 = arith.constant 0 : index
      %c0_29 = arith.constant 0 : index
      %37 = vector.load %arg7[%c0_27, %c0_28, %c0_29] : memref<1x128x1xf32, #tpu.memory_space<vmem>>, vector<1x128x1xf32>
      %38 = vector.shape_cast %37 : vector<1x128x1xf32> to vector<128x1xf32>
      %39 = vector.shape_cast %36 : vector<128x1xf32> to vector<1x128x1xf32>
      tpu.vector_store %arg7[%c0_27, %c0_28, %c0_29], %39 {strides = array<i32>} : memref<1x128x1xf32, #tpu.memory_space<vmem>>, vector<1x128x1xf32>,
      %cst_30 = arith.constant 0.000000e+00 : f32
      %40 = vector.broadcast %cst_30 : f32 to vector<128x1xf32>
      %c0_31 = arith.constant 0 : index
      %c0_32 = arith.constant 0 : index
      %c0_33 = arith.constant 0 : index
      %41 = vector.load %arg8[%c0_31, %c0_32, %c0_33] : memref<1x128x1xf32, #tpu.memory_space<vmem>>, vector<1x128x1xf32>
      %42 = vector.shape_cast %41 : vector<1x128x1xf32> to vector<128x1xf32>
      %43 = vector.shape_cast %40 : vector<128x1xf32> to vector<1x128x1xf32>
      tpu.vector_store %arg8[%c0_31, %c0_32, %c0_33], %43 {strides = array<i32>} : memref<1x128x1xf32, #tpu.memory_space<vmem>>, vector<1x128x1xf32>,
    } else {
    }
    %c0 = arith.constant 0 : index
    %c0_2 = arith.constant 0 : index
    %c0_3 = arith.constant 0 : index
    %5 = vector.load %arg3[%c0, %c0_2, %c0_3] : memref<1x4x256xf32, #tpu.memory_space<vmem>>, vector<1x4x256xf32>
    %6 = vector.shape_cast %5 : vector<1x4x256xf32> to vector<4x256xf32>
    %7 = arith.truncf %6 : vector<4x256xf32> to vector<4x256xbf16>
    %c0_4 = arith.constant 0 : index
    %c0_5 = arith.constant 0 : index
    %8 = vector.load %arg4[%c0_4, %c0_5] : memref<64x4xbf16, #tpu.memory_space<vmem>>, vector<64x4xbf16>
    %cst = arith.constant dense<0.000000e+00> : vector<64x256xf32>
    %9 = tpu.matmul %8, %7, %cst {dimension_numbers = #tpu.dot_dimension_numbers<[1], [0], [0], [1], [0, 0, 1, 1], [], []>} : vector<64x4xbf16>, vector<4x256xbf16>, vector<64x256xf32> -> vector<64x256xf32>
    %c0_6 = arith.constant 0 : index
    %c0_7 = arith.constant 0 : index
    %10 = vector.load %arg5[%c0_6, %c0_7] : memref<64x1xf32, #tpu.memory_space<vmem>>, vector<64x1xf32>
    %11 = vector.broadcast %10 : vector<64x1xf32> to vector<64x256xf32>
    %12 = arith.addf %9, %11 : vector<64x256xf32>
    %cst_8 = arith.constant 2.000000e-01 : f32
    %13 = vector.broadcast %cst_8 : f32 to vector<64x256xf32>
    %14 = arith.mulf %13, %12 : vector<64x256xf32>
    %15 = arith.maximumf %12, %14 : vector<64x256xf32>
    %c0_9 = arith.constant 0 : index
    %c0_10 = arith.constant 0 : index
    %16 = vector.load %arg6[%c0_9, %c0_10] : memref<128x64xbf16, #tpu.memory_space<vmem>>, vector<128x64xbf16>
    %17 = arith.truncf %15 : vector<64x256xf32> to vector<64x256xbf16>
    %cst_11 = arith.constant dense<0.000000e+00> : vector<128x256xf32>
    %18 = tpu.matmul %16, %17, %cst_11 {dimension_numbers = #tpu.dot_dimension_numbers<[1], [0], [0], [1], [0, 0, 1, 1], [], []>} : vector<128x64xbf16>, vector<64x256xbf16>, vector<128x256xf32> -> vector<128x256xf32>
    %c0_12 = arith.constant 0 : index
    %c0_13 = arith.constant 0 : index
    %c0_14 = arith.constant 0 : index
    %19 = vector.load %arg7[%c0_12, %c0_13, %c0_14] : memref<1x128x1xf32, #tpu.memory_space<vmem>>, vector<1x128x1xf32>
    %20 = vector.shape_cast %19 : vector<1x128x1xf32> to vector<128x1xf32>
    %cst_15 = arith.constant dense<0.000000e+00> : vector<128xf32>
    %21 = vector.multi_reduction <add>, %18, %cst_15 [1] : vector<128x256xf32> to vector<128xf32>
    %22 = vector.shape_cast %21 : vector<128xf32> to vector<128x1xf32>
    %23 = arith.addf %20, %22 : vector<128x1xf32>
    %c0_16 = arith.constant 0 : index
    %c0_17 = arith.constant 0 : index
    %c0_18 = arith.constant 0 : index
    %24 = vector.load %arg7[%c0_16, %c0_17, %c0_18] : memref<1x128x1xf32, #tpu.memory_space<vmem>>, vector<1x128x1xf32>
    %25 = vector.shape_cast %24 : vector<1x128x1xf32> to vector<128x1xf32>
    %26 = vector.shape_cast %23 : vector<128x1xf32> to vector<1x128x1xf32>
    tpu.vector_store %arg7[%c0_16, %c0_17, %c0_18], %26 {strides = array<i32>} : memref<1x128x1xf32, #tpu.memory_space<vmem>>, vector<1x128x1xf32>,
    %c0_19 = arith.constant 0 : index
    %c0_20 = arith.constant 0 : index
    %c0_21 = arith.constant 0 : index
    %27 = vector.load %arg8[%c0_19, %c0_20, %c0_21] : memref<1x128x1xf32, #tpu.memory_space<vmem>>, vector<1x128x1xf32>
    %28 = vector.shape_cast %27 : vector<1x128x1xf32> to vector<128x1xf32>
    %29 = arith.mulf %18, %18 : vector<128x256xf32>
    %cst_22 = arith.constant dense<0.000000e+00> : vector<128xf32>
    %30 = vector.multi_reduction <add>, %29, %cst_22 [1] : vector<128x256xf32> to vector<128xf32>
    %31 = vector.shape_cast %30 : vector<128xf32> to vector<128x1xf32>
    %32 = arith.addf %28, %31 : vector<128x1xf32>
    %c0_23 = arith.constant 0 : index
    %c0_24 = arith.constant 0 : index
    %c0_25 = arith.constant 0 : index
    %33 = vector.load %arg8[%c0_23, %c0_24, %c0_25] : memref<1x128x1xf32, #tpu.memory_space<vmem>>, vector<1x128x1xf32>
    %34 = vector.shape_cast %33 : vector<1x128x1xf32> to vector<128x1xf32>
    %35 = vector.shape_cast %32 : vector<128x1xf32> to vector<1x128x1xf32>
    tpu.vector_store %arg8[%c0_23, %c0_24, %c0_25], %35 {strides = array<i32>} : memref<1x128x1xf32, #tpu.memory_space<vmem>>, vector<1x128x1xf32>,
    return
  }
  func.func @transform_0(%arg0: i32, %arg1: i32, %arg2: i32) -> (i32, i32, i32) {
    %c1_i32 = arith.constant 1 : i32
    %0 = arith.muli %arg0, %c1_i32 : i32
    %1 = arith.addi %0, %arg2 : i32
    %c0_i32 = arith.constant 0 : i32
    %c0_i32_0 = arith.constant 0 : i32
    return %arg1, %c0_i32, %1 : i32, i32, i32
  }
  func.func @transform_1(%arg0: i32, %arg1: i32, %arg2: i32) -> (i32, i32) {
    %c0_i32 = arith.constant 0 : i32
    %c0_i32_0 = arith.constant 0 : i32
    %c0_i32_1 = arith.constant 0 : i32
    return %c0_i32, %c0_i32_0 : i32, i32
  }
  func.func @transform_2(%arg0: i32, %arg1: i32, %arg2: i32) -> (i32, i32) {
    %c0_i32 = arith.constant 0 : i32
    %c0_i32_0 = arith.constant 0 : i32
    %c0_i32_1 = arith.constant 0 : i32
    return %c0_i32, %c0_i32_0 : i32, i32
  }
  func.func @transform_3(%arg0: i32, %arg1: i32, %arg2: i32) -> (i32, i32) {
    %c0_i32 = arith.constant 0 : i32
    %c0_i32_0 = arith.constant 0 : i32
    %c0_i32_1 = arith.constant 0 : i32
    return %c0_i32, %c0_i32_0 : i32, i32
  }
  func.func @transform_4(%arg0: i32, %arg1: i32, %arg2: i32) -> (i32, i32, i32) {
    %c0_i32 = arith.constant 0 : i32
    %c0_i32_0 = arith.constant 0 : i32
    %c0_i32_1 = arith.constant 0 : i32
    return %arg0, %c0_i32, %c0_i32_0 : i32, i32, i32
  }
  func.func @transform_5(%arg0: i32, %arg1: i32, %arg2: i32) -> (i32, i32, i32) {
    %c0_i32 = arith.constant 0 : i32
    %c0_i32_0 = arith.constant 0 : i32
    %c0_i32_1 = arith.constant 0 : i32
    return %arg0, %c0_i32, %c0_i32_0 : i32, i32, i32
  }
}

</mosaic_0001>

<bundles_post_ra>
// kernel: tpu_custom_call.1
= control target key start
LH: loop header
LB: loop body
LE: loop exit
PB: predicated region body
PF: predicated region fallthrough
CT: control target
= control target key end

     0   :  { %s1197_s18 = smov 0   ;;  %s1199_s19 = smov 0   ;;  %s1671_s0 = inlined_call_operand.vmem [shape: f32[2,4,256], index: 0, kind: input, shape index: {}]   ;;  %s1672_s1 = inlined_call_operand.vmem [shape: bf16[64,4], index: 1, kind: input, shape index: {}]   ;;  %s1673_s2 = inlined_call_operand.vmem [shape: f32[64,1], index: 2, kind: input, shape index: {}]   ;;  %s1674_s3 = inlined_call_operand.vmem [shape: bf16[128,64], index: 3, kind: input, shape index: {}]   ;;  %s1675_s4 = inlined_call_operand.vmem [shape: f32[1,128,1], index: 4, kind: output, shape index: {0}]   ;;  %s1676_s5 = inlined_call_operand.vmem [shape: f32[1,128,1], index: 5, kind: output, shape index: {1}]  }
   0x1   :  { %s1201_s20 = smov 0  }
   0x2 LB: > { %s31_s21 = sadd.s32 1, %s1159_s19  ;;  %p1057_p0 = scmp.ge.s32.totalorder %s1163_s20, 1  ;;  %s1163_s20 = sphi %s1201_s20, %s16_s20   ;;  %s1159_s19 = sphi %s1199_s19, %s1678_s19   ;;  %s1155_s18 = sphi %s1197_s18, %s1677_s18  }
   0x3   : > { %p33_p1 = scmp.ge.s32.totalorder %s31_s21, 2  ;;  %p220_p2 = scmp.lt.s32.totalorder %s1163_s20, 3 }
   0x5   : > { %s1680_s21 = smov (%p33_p1, %s31_s21), 0  ;;  %p221_p3 = pnand %p1057_p0, %p220_p2 }
   0x6   : > { %p260_p4 = scmp.lt.s32.totalorder (!%p221_p3), %s1155_s18, 1  ;;  %p281_p5 = scmp.eq.s32.totalorder (!%p221_p3), %s1155_s18, 0 }
   0x7   : > { %224 = sbr.rel (%p221_p3) target bundleno = 687 (0x2af), region = 36 }
   0xc   : > { %s1682_s18 = smov (!%p260_p4, %s1155_s18), 1  ;;  %286 = sbr.rel (!%p281_p5) target bundleno = 29 (0x1d), region = 40  ;;  %vm287_vm0 = vcmask (%p281_p5), 7168   ;;  %v1165_v0 = vmov (%p281_p5), 0.0  }
   0xd   : > { %s1090_s22 = sshll.u32 %s1682_s18, 3  ;;  %288 = vst.msk [vmem:[%s1675_s4] sm:$0xff] (%p281_p5), %vm287_vm0, %v1165_v0  ;;  %289 = vst.msk [vmem:[%s1675_s4 + $0x8] sm:$0xff] (%p281_p5), %vm287_vm0, %v1165_v0 }
   0xe   : > { %s1218_s25 = scalar_lea.vmem %s1671_s0, %s1090_s22  ;;  %290 = vst.msk [vmem:[%s1675_s4 + $0x10] sm:$0xff] (%p281_p5), %vm287_vm0, %v1165_v0  ;;  %291 = vst.msk [vmem:[%s1675_s4 + $0x18] sm:$0xff] (%p281_p5), %vm287_vm0, %v1165_v0 }
   0xf   : > { %292 = vst.msk [vmem:[%s1675_s4 + $0x20] sm:$0xff] (%p281_p5), %vm287_vm0, %v1165_v0  ;;  %293 = vst.msk [vmem:[%s1675_s4 + $0x28] sm:$0xff] (%p281_p5), %vm287_vm0, %v1165_v0 }
  0x10   : > { %294 = vst.msk [vmem:[%s1675_s4 + $0x30] sm:$0xff] (%p281_p5), %vm287_vm0, %v1165_v0  ;;  %295 = vst.msk [vmem:[%s1675_s4 + $0x38] sm:$0xff] (%p281_p5), %vm287_vm0, %v1165_v0 }
  0x11   : > { %296 = vst.msk [vmem:[%s1675_s4 + $0x40] sm:$0xff] %vm287_vm0, %v1165_v0  ;;  %297 = vst.msk [vmem:[%s1675_s4 + $0x48] sm:$0xff] %vm287_vm0, %v1165_v0 }
  0x12   : > { %298 = vst.msk [vmem:[%s1675_s4 + $0x50] sm:$0xff] %vm287_vm0, %v1165_v0  ;;  %299 = vst.msk [vmem:[%s1675_s4 + $0x58] sm:$0xff] %vm287_vm0, %v1165_v0 }
  0x13   : > { %300 = vst.msk [vmem:[%s1675_s4 + $0x60] sm:$0xff] %vm287_vm0, %v1165_v0  ;;  %301 = vst.msk [vmem:[%s1675_s4 + $0x68] sm:$0xff] %vm287_vm0, %v1165_v0 }
  0x14   : > { %302 = vst.msk [vmem:[%s1675_s4 + $0x70] sm:$0xff] %vm287_vm0, %v1165_v0  ;;  %303 = vst.msk [vmem:[%s1675_s4 + $0x78] sm:$0xff] %vm287_vm0, %v1165_v0 }
  0x15   : > { %304 = vst.msk [vmem:[%s1676_s5] sm:$0xff] %vm287_vm0, %v1165_v0  ;;  %305 = vst.msk [vmem:[%s1676_s5 + $0x8] sm:$0xff] %vm287_vm0, %v1165_v0 }
  0x16   : > { %306 = vst.msk [vmem:[%s1676_s5 + $0x10] sm:$0xff] %vm287_vm0, %v1165_v0  ;;  %307 = vst.msk [vmem:[%s1676_s5 + $0x18] sm:$0xff] %vm287_vm0, %v1165_v0 }
  0x17   : > { %308 = vst.msk [vmem:[%s1676_s5 + $0x20] sm:$0xff] %vm287_vm0, %v1165_v0  ;;  %309 = vst.msk [vmem:[%s1676_s5 + $0x28] sm:$0xff] %vm287_vm0, %v1165_v0 }
  0x18   : > { %310 = vst.msk [vmem:[%s1676_s5 + $0x30] sm:$0xff] %vm287_vm0, %v1165_v0  ;;  %311 = vst.msk [vmem:[%s1676_s5 + $0x38] sm:$0xff] %vm287_vm0, %v1165_v0 }
  0x19   : > { %312 = vst.msk [vmem:[%s1676_s5 + $0x40] sm:$0xff] %vm287_vm0, %v1165_v0  ;;  %313 = vst.msk [vmem:[%s1676_s5 + $0x48] sm:$0xff] %vm287_vm0, %v1165_v0 }
  0x1a   : > { %314 = vst.msk [vmem:[%s1676_s5 + $0x50] sm:$0xff] %vm287_vm0, %v1165_v0  ;;  %315 = vst.msk [vmem:[%s1676_s5 + $0x58] sm:$0xff] %vm287_vm0, %v1165_v0 }
  0x1b   : > { %316 = vst.msk [vmem:[%s1676_s5 + $0x60] sm:$0xff] %vm287_vm0, %v1165_v0  ;;  %317 = vst.msk [vmem:[%s1676_s5 + $0x68] sm:$0xff] %vm287_vm0, %v1165_v0 }
  0x1c   : > { %318 = vst.msk [vmem:[%s1676_s5 + $0x70] sm:$0xff] %vm287_vm0, %v1165_v0  ;;  %319 = vst.msk [vmem:[%s1676_s5 + $0x78] sm:$0xff] %vm287_vm0, %v1165_v0 }
  0x1d PF: > { %v320_v1 = vld [vmem:[%s1218_s25] sm:$0xff]  ;;  %vm415_vm1 = vcmask 1041408   ;;  %v1166_v4 = vmov 0   ;;  %v340_v7 = vld [vmem:[%s1673_s2 + $0x30] sm:$0xff]  ;;  %vm402_vm2 = vcmask 31744   ;;  %v341_v10 = vld [vmem:[%s1673_s2 + $0x38] sm:$0xff] }
  0x1e   : > { %v322_v2 = vcombine.high %v320_v1, %v320_v1  ;;  %v324_v3 = vpack.c.bf16 %v320_v1, %v320_v1  ;;  %454 = vmatprep.mubr.bf16.mxu0 %v1166_v4  ;;  %1126 = vset.pattern.permute.xlu0 %v1166_v4  ;;  %v1129_v8 = vld [vmem:[%s1672_s1] sm:$0xff]   ;;  %v339_v11 = vld [vmem:[%s1673_s2 + $0x28] sm:$0xff]  ;;  %v336_v12 = vld [vmem:[%s1673_s2 + $0x10] sm:$0xff]  ;;  %vm591_vm3 = vcmask 523264   ;;  %vm809_vm4 = vcmask 7168  }
  0x1f   : > { %1127 = vset.pattern.permute.xlu1 %v1166_v4  ;;  %668 = vmatprep.mubr.bf16.mxu1 %v1166_v4  ;;  %v338_v9 = vld [vmem:[%s1673_s2 + $0x20] sm:$0xff]  ;;  %v337_v13 = vld [vmem:[%s1673_s2 + $0x18] sm:$0xff]  ;;  %v1130_v14 = vld [vmem:[%s1672_s1 + $0x8] sm:$0xff]  }
  0x20   : > { %v325_v5 = vpack.c.bf16 %v322_v2, %v322_v2  ;;  %v417_v6 = vsel %vm415_vm1, %v324_v3, 0  ;;  %374 = vperm.xlu0 %1126, %v340_v7   ;;  %364 = vperm.xlu1 %1127, %v338_v9   ;;  %v334_v15 = vld [vmem:[%s1673_s2] sm:$0xff]  ;;  %v335_v16 = vld [vmem:[%s1673_s2 + $0x8] sm:$0xff]  ;;  %v1131_v17 = vld [vmem:[%s1672_s1 + $0x10] sm:$0xff]  }
  0x21   : > { %v1132_v18 = vld [vmem:[%s1672_s1 + $0x18] sm:$0xff]  }
  0x22   : > { %1065 = vmatprep.subr.msk.bf16.mxu0 %vm415_vm1, %v325_v5 }
  0x23   : > { %437 = vmatpush1.bf16.msra.mxu0 %v417_v6 }
  0x24   : > { %379 = vperm.xlu0 %1126, %v341_v10   ;;  %369 = vperm.xlu1 %1127, %v339_v11  }
  0x26   : > { %1066 = vmatmul.mubr.msk.bf16.vlgmr.msra.gmra.mxu0 %vm402_vm2, %v1129_v8 }
  0x27   : > { %464 = vmatprep.mubr.bf16.mxu0 %v1166_v4 }
  0x28   : > { %354 = vperm.xlu0 %1126, %v336_v12   ;;  %359 = vperm.xlu1 %1127, %v337_v13  }
  0x2c   : > { %344 = vperm.xlu0 %1126, %v334_v15   ;;  %349 = vperm.xlu1 %1127, %v335_v16  }
  0x2e   : > { %1067 = vmatmul.mubr.msk.bf16.gmra.mxu0 %vm402_vm2, %v1130_v14 }
  0x2f   : > { %474 = vmatprep.mubr.bf16.mxu0 %v1166_v4 }
  0x36   : > { %1068 = vmatmul.mubr.msk.bf16.gmra.mxu0 %vm402_vm2, %v1131_v17 }
  0x37   : > { %484 = vmatprep.mubr.bf16.mxu0 %v1166_v4 }
  0x3e   : > { %1069 = vmatmul.mubr.msk.bf16.gmra.mxu0 %vm402_vm2, %v1132_v18 }
  0x3f   : > { %648 = vmatprep.mubr.bf16.mxu0 %v1166_v4 }
  0x9b   : > { %v365_v27 = vpop.permute.xlu1 %364  ;;  %v375_v29 = vpop.permute.xlu0 %374 }
  0x9f   : > { %v370_v32 = vpop.permute.xlu1 %369  ;;  %v380_v34 = vpop.permute.xlu0 %379 }
  0xa3   : > { %v360_v37 = vpop.permute.xlu1 %359  ;;  %v355_v44 = vpop.permute.xlu0 %354 }
  0xa7   : > { %v350_v54 = vpop.permute.xlu1 %349  ;;  %v345_v2 = vpop.permute.xlu0 %344 }
  0xe6   : > { %v1397_v19 = vpop.f32.mrf.mxu0 }
  0xe7   : > { %v457_v18 = vadd.f32 %v1397_v19, %v345_v2 }
  0xe8   : > { %v458_v20 = vpop.f32.mrf.mxu0 }
  0xe9   : > { %v459_v7 = vadd.f32 %v458_v20, %v345_v2 }
  0xea   : > { %v460_v21 = vpop.f32.mrf.mxu0 }
  0xeb   : > { %v461_v11 = vadd.f32 %v460_v21, %v350_v54 }
  0xec   : > { %v462_v22 = vpop.f32.mrf.mxu0 }
  0xed   : > { %v463_v58 = vadd.f32 %v462_v22, %v350_v54 }
  0xee   : > { %v466_v23 = vpop.f32.mrf.mxu0 }
  0xef   : > { %v467_v3 = vadd.f32 %v466_v23, %v355_v44  ;;  %v498_v15 = vmul.f32 0.2, %v463_v58  ;;  %v496_v23 = vmul.f32 0.2, %v459_v7 }
  0xf0   : > { %v468_v24 = vpop.f32.mrf.mxu0 }
  0xf1   : > { %v469_v55 = vadd.f32 %v468_v24, %v355_v44  ;;  %v499_v22 = vmul.f32 0.2, %v467_v3 }
  0xf2   : > { %v470_v25 = vpop.f32.mrf.mxu0 }
  0xf3   : > { %v471_v59 = vadd.f32 %v470_v25, %v360_v37  ;;  %v500_v8 = vmul.f32 0.2, %v469_v55  ;;  %v497_v25 = vmul.f32 0.2, %v461_v11 }
  0xf4   : > { %v472_v26 = vpop.f32.mrf.mxu0 }
  0xf5   : > { %v473_v45 = vadd.f32 %v472_v26, %v360_v37  ;;  %v501_v12 = vmul.f32 0.2, %v471_v59  ;;  %v516_v20 = vmax.f32 %v469_v55, %v500_v8  ;;  %v513_v19 = vmax.f32 %v461_v11, %v497_v25  ;;  %v1134_v37 = vld [vmem:[%s1674_s3] sm:$0xff]  }
  0xf6   : > { %v476_v28 = vpop.f32.mrf.mxu0 }
  0xf7   : > { %v477_v52 = vadd.f32 %v476_v28, %v365_v27  ;;  %v502_v62 = vmul.f32 0.2, %v473_v45  ;;  %v517_v21 = vmax.f32 %v471_v59, %v501_v12 }
  0xf8   : > { %v478_v30 = vpop.f32.mrf.mxu0 }
  0xf9   : > { %v479_v42 = vadd.f32 %v478_v30, %v365_v27  ;;  %v503_v5 = vmul.f32 0.2, %v477_v52  ;;  %v518_v16 = vmax.f32 %v473_v45, %v502_v62  ;;  %v514_v27 = vmax.f32 %v463_v58, %v498_v15 }
  0xfa   : > { %v480_v31 = vpop.f32.mrf.mxu0  ;;  %v515_v30 = vmax.f32 %v467_v3, %v499_v22 }
  0xfb   : > { %v481_v46 = vadd.f32 %v480_v31, %v370_v32  ;;  %v504_v56 = vmul.f32 0.2, %v479_v42  ;;  %v519_v24 = vmax.f32 %v477_v52, %v503_v5  ;;  %v546_v28 = vpack.c.bf16 %v518_v16, %v516_v20 }
  0xfc   : > { %v482_v33 = vpop.f32.mrf.mxu0  ;;  %v512_v31 = vmax.f32 %v459_v7, %v496_v23 }
  0xfd   : > { %v483_v38 = vadd.f32 %v482_v33, %v370_v32  ;;  %v505_v60 = vmul.f32 0.2, %v481_v46  ;;  %v520_v9 = vmax.f32 %v479_v42, %v504_v56  ;;  %v545_v32 = vpack.c.bf16 %v517_v21, %v515_v30  ;;  %v1139_v42 = vld [vmem:[%s1674_s3 + $0x30] sm:$0xff]  }
  0xfe   : > { %v486_v35 = vpop.f32.mrf.mxu0  ;;  %v544_v33 = vpack.c.bf16 %v514_v27, %v512_v31 }
  0xff   : > { %v487_v40 = vadd.f32 %v486_v35, %v375_v29  ;;  %v506_v48 = vmul.f32 0.2, %v483_v38  ;;  %v521_v13 = vmax.f32 %v481_v46, %v505_v60 }
 0x100   : > { %v488_v36 = vpop.f32.mrf.mxu0 }
 0x101   : > { %v489_v39 = vadd.f32 %v488_v36, %v375_v29  ;;  %v507_v53 = vmul.f32 0.2, %v487_v40  ;;  %v522_v63 = vmax.f32 %v483_v38, %v506_v48  ;;  %v547_v26 = vpack.c.bf16 %v521_v13, %v519_v24  ;;  %v1133_v36 = vld [vmem:[%s1674_s3 + $0x10] sm:$0xff]   ;;  %v1135_v38 = vld [vmem:[%s1674_s3 + $0x8] sm:$0xff]  }
 0x102   : > { %v490_v41 = vpop.f32.mrf.mxu0  ;;  %v495_v29 = vmul.f32 0.2, %v457_v18 }
 0x103   : > { %v491_v43 = vadd.f32 %v490_v41, %v380_v34  ;;  %v508_v49 = vmul.f32 0.2, %v489_v39  ;;  %v523_v6 = vmax.f32 %v487_v40, %v507_v53  ;;  %v548_v17 = vpack.c.bf16 %v522_v63, %v520_v9  ;;  %v1137_v40 = vld [vmem:[%s1674_s3 + $0x20] sm:$0xff]   ;;  %v1138_v41 = vld [vmem:[%s1674_s3 + $0x28] sm:$0xff]  }
 0x104   : > { %v492_v47 = vpop.f32.mrf.mxu0 }
 0x105   : > { %v509_v50 = vmul.f32 0.2, %v491_v43  ;;  %v493_v51 = vadd.f32 %v492_v47, %v380_v34  ;;  %v524_v0 = vmax.f32 %v489_v39, %v508_v49  ;;  %v511_v34 = vmax.f32 %v457_v18, %v495_v29  ;;  %v1136_v39 = vld [vmem:[%s1674_s3 + $0x18] sm:$0xff]  }
 0x107   : > { %v510_v57 = vmul.f32 0.2, %v493_v51  ;;  %v525_v61 = vmax.f32 %v491_v43, %v509_v50  ;;  %v543_v35 = vpack.c.bf16 %v513_v19, %v511_v34  ;;  %v1140_v43 = vld [vmem:[%s1674_s3 + $0x38] sm:$0xff]  }
 0x109   : > { %v526_v1 = vmax.f32 %v493_v51, %v510_v57  ;;  %v549_v14 = vpack.c.bf16 %v525_v61, %v523_v6 }
 0x10b   : > { %v550_v10 = vpack.c.bf16 %v526_v1, %v524_v0 }
 0x10d   : > { %624 = vmatprep.subr.bf16.mxu0 %v550_v10  ;;  %1092 = vmatprep.subr.bf16.mxu1 %v550_v10 }
 0x10e   : > { %625 = vmatpush1.bf16.msra.mxu0 %v549_v14  ;;  %1096 = vmatpush1.bf16.msra.mxu1 %v549_v14 }
 0x10f   : > { %626 = vmatprep.subr.bf16.mxu0 %v548_v17  ;;  %1093 = vmatprep.subr.bf16.mxu1 %v548_v17 }
 0x112   : > { %627 = vmatpush1.bf16.msra.mxu0 %v547_v26  ;;  %1097 = vmatpush1.bf16.msra.mxu1 %v547_v26 }
 0x113   : > { %628 = vmatprep.subr.bf16.mxu0 %v546_v28  ;;  %1094 = vmatprep.subr.bf16.mxu1 %v546_v28 }
 0x116   : > { %629 = vmatpush1.bf16.msra.mxu0 %v545_v32  ;;  %1098 = vmatpush1.bf16.msra.mxu1 %v545_v32 }
 0x117   : > { %630 = vmatprep.subr.bf16.mxu0 %v544_v33  ;;  %1095 = vmatprep.subr.bf16.mxu1 %v544_v33 }
 0x11a   : > { %631 = vmatpush1.bf16.msra.mxu0 %v543_v35  ;;  %1099 = vmatpush1.bf16.msra.mxu1 %v543_v35 }
 0x11d   : > { %1080 = vmatmul.mubr.msk.bf16.vlgmr.msra.gmra.mxu1 %vm591_vm3, %v1133_v36  ;;  %1078 = vmatmul.mubr.msk.bf16.vlgmr.msra.gmra.mxu0 %vm591_vm3, %v1134_v37 }
 0x11e   : > { %658 = vmatprep.mubr.bf16.mxu0 %v1166_v4  ;;  %678 = vmatprep.mubr.bf16.mxu1 %v1166_v4 }
 0x125   : > { %1079 = vmatmul.mubr.msk.bf16.gmra.mxu0 %vm591_vm3, %v1135_v38  ;;  %1081 = vmatmul.mubr.msk.bf16.gmra.mxu1 %vm591_vm3, %v1136_v39 }
 0x126   : > { %688 = vmatprep.mubr.bf16.mxu1 %v1166_v4 }
 0x12d   : > { %1082 = vmatmul.mubr.msk.bf16.gmra.mxu1 %vm591_vm3, %v1137_v40 }
 0x12e   : > { %698 = vmatprep.mubr.bf16.mxu1 %v1166_v4 }
 0x135   : > { %1083 = vmatmul.mubr.msk.bf16.gmra.mxu1 %vm591_vm3, %v1138_v41 }
 0x136   : > { %708 = vmatprep.mubr.bf16.mxu1 %v1166_v4 }
 0x13d   : > { %1084 = vmatmul.mubr.msk.bf16.gmra.mxu1 %vm591_vm3, %v1139_v42 }
 0x13e   : > { %718 = vmatprep.mubr.bf16.mxu1 %v1166_v4 }
 0x145   : > { %1085 = vmatmul.mubr.msk.bf16.gmra.mxu1 %vm591_vm3, %v1140_v43 }
 0x1dd   : > { %v670_v44 = vpop.f32.mrf.mxu1  ;;  %v650_v45 = vpop.f32.mrf.mxu0 }
 0x1de   : > { %v842_v53 = vmul.f32 %v650_v45, %v650_v45  ;;  %v850_v61 = vmul.f32 %v670_v44, %v670_v44 }
 0x1df   : > { %v672_v46 = vpop.f32.mrf.mxu1  ;;  %v652_v47 = vpop.f32.mrf.mxu0 }
 0x1e0   : > { %v843_v48 = vmul.f32 %v652_v47, %v652_v47  ;;  %v757_v49 = vadd.f32 %v672_v46, %v670_v44  ;;  %v745_v50 = vadd.f32 %v652_v47, %v650_v45  ;;  %v851_v55 = vmul.f32 %v672_v46, %v672_v46 }
 0x1e1   : > { %v674_v51 = vpop.f32.mrf.mxu1  ;;  %v654_v52 = vpop.f32.mrf.mxu0 }
 0x1e2   : > { %758 = vadd.xlane.f32.xlu1 %v757_v49  ;;  %746 = vadd.xlane.f32.xlu0 %v745_v50  ;;  %v874_v56 = vadd.f32 %v843_v48, %v842_v53  ;;  %v844_v62 = vmul.f32 %v654_v52, %v654_v52  ;;  %v886_v1 = vadd.f32 %v851_v55, %v850_v61 }
 0x1e3   : > { %v676_v54 = vpop.f32.mrf.mxu1  ;;  %v656_v4 = vpop.f32.mrf.mxu0  ;;  %v852_v6 = vmul.f32 %v674_v51, %v674_v51 }
 0x1e4   : > { %v845_v57 = vmul.f32 %v656_v4, %v656_v4  ;;  %v760_v58 = vadd.f32 %v676_v54, %v674_v51  ;;  %v853_v0 = vmul.f32 %v676_v54, %v676_v54  ;;  %v748_v8 = vadd.f32 %v656_v4, %v654_v52 }
 0x1e5   : > { %v660_v59 = vpop.f32.mrf.mxu0  ;;  %v680_v60 = vpop.f32.mrf.mxu1 }
 0x1e6   : > { %875 = vadd.xlane.f32.xlu1 %v874_v56  ;;  %761 = vadd.xlane.f32.xlu0 %v760_v58  ;;  %v877_v2 = vadd.f32 %v845_v57, %v844_v62  ;;  %v889_v9 = vadd.f32 %v853_v0, %v852_v6  ;;  %v846_v14 = vmul.f32 %v660_v59, %v660_v59 }
 0x1e7   : > { %v682_v63 = vpop.f32.mrf.mxu1  ;;  %v662_v3 = vpop.f32.mrf.mxu0  ;;  %v854_v24 = vmul.f32 %v680_v60, %v680_v60 }
 0x1e8   : > { %v763_v12 = vadd.f32 %v682_v63, %v680_v60  ;;  %v847_v15 = vmul.f32 %v662_v3, %v662_v3  ;;  %v751_v16 = vadd.f32 %v662_v3, %v660_v59  ;;  %v855_v20 = vmul.f32 %v682_v63, %v682_v63 }
 0x1e9   : > { %v684_v5 = vpop.f32.mrf.mxu1  ;;  %v664_v10 = vpop.f32.mrf.mxu0 }
 0x1ea   : > { %887 = vadd.xlane.f32.xlu1 %v886_v1  ;;  %878 = vadd.xlane.f32.xlu0 %v877_v2  ;;  %v880_v25 = vadd.f32 %v847_v15, %v846_v14  ;;  %v848_v27 = vmul.f32 %v664_v10, %v664_v10  ;;  %v892_v30 = vadd.f32 %v855_v20, %v854_v24 }
 0x1eb   : > { %v686_v7 = vpop.f32.mrf.mxu1  ;;  %v666_v17 = vpop.f32.mrf.mxu0  ;;  %v856_v35 = vmul.f32 %v684_v5, %v684_v5 }
 0x1ec   : > { %v754_v23 = vadd.f32 %v666_v17, %v664_v10  ;;  %v849_v28 = vmul.f32 %v666_v17, %v666_v17  ;;  %v766_v29 = vadd.f32 %v686_v7, %v684_v5  ;;  %v857_v36 = vmul.f32 %v686_v7, %v686_v7 }
 0x1ed   : > { %v690_v11 = vpop.f32.mrf.mxu1 }
 0x1ee   : > { %749 = vadd.xlane.f32.xlu1 %v748_v8  ;;  %890 = vadd.xlane.f32.xlu0 %v889_v9  ;;  %v858_v19 = vmul.f32 %v690_v11, %v690_v11  ;;  %v883_v37 = vadd.f32 %v849_v28, %v848_v27  ;;  %v895_v40 = vadd.f32 %v857_v36, %v856_v35  ;;  %v731_v36 = vld [vmem:[%s1675_s4 + $0x10] sm:$0xff] }
 0x1ef   : > { %v692_v13 = vpop.f32.mrf.mxu1 }
 0x1f0   : > { %v859_v32 = vmul.f32 %v692_v13, %v692_v13  ;;  %v769_v33 = vadd.f32 %v692_v13, %v690_v11  ;;  %v729_v13 = vld [vmem:[%s1675_s4] sm:$0xff] }
 0x1f1   : > { %v694_v18 = vpop.f32.mrf.mxu1 }
 0x1f2   : > { %752 = vadd.xlane.f32.xlu0 %v751_v16  ;;  %764 = vadd.xlane.f32.xlu1 %v763_v12  ;;  %v898_v39 = vadd.f32 %v859_v32, %v858_v19  ;;  %v860_v45 = vmul.f32 %v694_v18, %v694_v18  ;;  %v733_v12 = vld [vmem:[%s1675_s4 + $0x20] sm:$0xff]  ;;  %v831_v19 = vld [vmem:[%s1676_s5 + $0x28] sm:$0xff] }
 0x1f3   : > { %v696_v22 = vpop.f32.mrf.mxu1 }
 0x1f4   : > { %v861_v46 = vmul.f32 %v696_v22, %v696_v22  ;;  %v772_v47 = vadd.f32 %v696_v22, %v694_v18  ;;  %v826_v18 = vld [vmem:[%s1676_s5] sm:$0xff]  ;;  %v734_v22 = vld [vmem:[%s1675_s4 + $0x28] sm:$0xff] }
 0x1f5   : > { %v700_v21 = vpop.f32.mrf.mxu1 }
 0x1f6   : > { %755 = vadd.xlane.f32.xlu0 %v754_v23  ;;  %881 = vadd.xlane.f32.xlu1 %v880_v25  ;;  %v862_v42 = vmul.f32 %v700_v21, %v700_v21  ;;  %v901_v50 = vadd.f32 %v861_v46, %v860_v45 }
 0x1f7   : > { %v702_v26 = vpop.f32.mrf.mxu1 }
 0x1f8   : > { %v863_v43 = vmul.f32 %v702_v26, %v702_v26  ;;  %v775_v44 = vadd.f32 %v702_v26, %v700_v21  ;;  %v830_v21 = vld [vmem:[%s1676_s5 + $0x20] sm:$0xff]  ;;  %v827_v26 = vld [vmem:[%s1676_s5 + $0x8] sm:$0xff] }
 0x1f9   : > { %v704_v31 = vpop.f32.mrf.mxu1 }
 0x1fa   : > { %767 = vadd.xlane.f32.xlu0 %v766_v29  ;;  %893 = vadd.xlane.f32.xlu1 %v892_v30  ;;  %v904_v49 = vadd.f32 %v863_v43, %v862_v42  ;;  %v864_v4 = vmul.f32 %v704_v31, %v704_v31  ;;  %v732_v42 = vld [vmem:[%s1675_s4 + $0x18] sm:$0xff]  ;;  %v828_v43 = vld [vmem:[%s1676_s5 + $0x10] sm:$0xff] }
 0x1fb   : > { %v706_v34 = vpop.f32.mrf.mxu1 }
 0x1fc   : > { %v865_v55 = vmul.f32 %v706_v34, %v706_v34  ;;  %v778_v56 = vadd.f32 %v706_v34, %v704_v31  ;;  %v730_v31 = vld [vmem:[%s1675_s4 + $0x8] sm:$0xff] }
 0x1fd   : > { %v710_v38 = vpop.f32.mrf.mxu1 }
 0x1fe   : > { %884 = vadd.xlane.f32.xlu0 %v883_v37  ;;  %770 = vadd.xlane.f32.xlu1 %v769_v33  ;;  %v866_v52 = vmul.f32 %v710_v38, %v710_v38  ;;  %v907_v59 = vadd.f32 %v865_v55, %v864_v4  ;;  %v735_v37 = vld [vmem:[%s1675_s4 + $0x30] sm:$0xff]  ;;  %v737_v4 = vld [vmem:[%s1675_s4 + $0x40] sm:$0xff] }
 0x1ff   : > { %v712_v41 = vpop.f32.mrf.mxu1 }
 0x200   : > { %v867_v53 = vmul.f32 %v712_v41, %v712_v41  ;;  %v781_v54 = vadd.f32 %v712_v41, %v710_v38 }
 0x201   : > { %v714_v48 = vpop.f32.mrf.mxu1 }
 0x202   : > { %896 = vadd.xlane.f32.xlu0 %v895_v40  ;;  %899 = vadd.xlane.f32.xlu1 %v898_v39  ;;  %v910_v58 = vadd.f32 %v867_v53, %v866_v52  ;;  %v868_v0 = vmul.f32 %v714_v48, %v714_v48 }
 0x203   : > { %v716_v51 = vpop.f32.mrf.mxu1 }
 0x204   : > { %v869_v1 = vmul.f32 %v716_v51, %v716_v51  ;;  %v784_v2 = vadd.f32 %v716_v51, %v714_v48  ;;  %v736_v48 = vld [vmem:[%s1675_s4 + $0x38] sm:$0xff] }
 0x205   : > { %v720_v57 = vpop.f32.mrf.mxu1 }
 0x206   : > { %773 = vadd.xlane.f32.xlu0 %v772_v47  ;;  %776 = vadd.xlane.f32.xlu1 %v775_v44  ;;  %v870_v61 = vmul.f32 %v720_v57, %v720_v57  ;;  %v913_v6 = vadd.f32 %v869_v1, %v868_v0  ;;  %v738_v1 = vld [vmem:[%s1675_s4 + $0x48] sm:$0xff] }
 0x207   : > { %v722_v60 = vpop.f32.mrf.mxu1 }
 0x208   : > { %v871_v62 = vmul.f32 %v722_v60, %v722_v60  ;;  %v787_v63 = vadd.f32 %v722_v60, %v720_v57  ;;  %v834_v60 = vld [vmem:[%s1676_s5 + $0x40] sm:$0xff] }
 0x209   : > { %v724_v3 = vpop.f32.mrf.mxu1 }
 0x20a   : > { %902 = vadd.xlane.f32.xlu0 %v901_v50  ;;  %905 = vadd.xlane.f32.xlu1 %v904_v49  ;;  %v916_v5 = vadd.f32 %v871_v62, %v870_v61  ;;  %v872_v8 = vmul.f32 %v724_v3, %v724_v3  ;;  %v832_v49 = vld [vmem:[%s1676_s5 + $0x30] sm:$0xff] }
 0x20b   : > { %v726_v7 = vpop.f32.mrf.mxu1 }
 0x20c   : > { %v790_v9 = vadd.f32 %v726_v7, %v724_v3  ;;  %v873_v10 = vmul.f32 %v726_v7, %v726_v7 }
 0x20e   : > { %779 = vadd.xlane.f32.xlu0 %v778_v56  ;;  %782 = vadd.xlane.f32.xlu1 %v781_v54  ;;  %v919_v11 = vadd.f32 %v873_v10, %v872_v8  ;;  %v829_v54 = vld [vmem:[%s1676_s5 + $0x18] sm:$0xff]  ;;  %v835_v8 = vld [vmem:[%s1676_s5 + $0x48] sm:$0xff] }
 0x212   : > { %908 = vadd.xlane.f32.xlu0 %v907_v59  ;;  %911 = vadd.xlane.f32.xlu1 %v910_v58  ;;  %v833_v59 = vld [vmem:[%s1676_s5 + $0x38] sm:$0xff] }
 0x216   : > { %785 = vadd.xlane.f32.xlu0 %v784_v2  ;;  %788 = vadd.xlane.f32.xlu1 %v787_v63  ;;  %v739_v2 = vld [vmem:[%s1675_s4 + $0x50] sm:$0xff] }
 0x21a   : > { %914 = vadd.xlane.f32.xlu0 %v913_v6  ;;  %917 = vadd.xlane.f32.xlu1 %v916_v5 }
 0x21e   : > { %791 = vadd.xlane.f32.xlu0 %v790_v9  ;;  %v836_v9 = vld [vmem:[%s1676_s5 + $0x50] sm:$0xff] }
 0x222   : > { %920 = vadd.xlane.f32.xlu0 %v919_v11 }
 0x26b   : > { %v759_v14 = vpop.xlane.xlu1 %758  ;;  %v747_v15 = vpop.xlane.xlu0 %746 }
 0x26c   : > { %v797_v16 = vadd.f32 %v759_v14, %v733_v12  ;;  %v793_v17 = vadd.f32 %v747_v15, %v729_v13  ;;  %v740_v14 = vld [vmem:[%s1675_s4 + $0x58] sm:$0xff]  ;;  %v741_v15 = vld [vmem:[%s1675_s4 + $0x60] sm:$0xff] }
 0x26e   : > { %814 = vst.msk [vmem:[%s1675_s4 + $0x20] sm:$0xff] %vm809_vm4, %v797_v16  ;;  %810 = vst.msk [vmem:[%s1675_s4] sm:$0xff] %vm809_vm4, %v793_v17 }
 0x26f   : > { %v876_v24 = vpop.xlane.xlu1 %875  ;;  %v762_v23 = vpop.xlane.xlu0 %761 }
 0x270   : > { %v922_v20 = vadd.f32 %v876_v24, %v826_v18  ;;  %v798_v25 = vadd.f32 %v762_v23, %v734_v22  ;;  %v837_v24 = vld [vmem:[%s1676_s5 + $0x58] sm:$0xff]  ;;  %v838_v23 = vld [vmem:[%s1676_s5 + $0x60] sm:$0xff] }
 0x272   : > { %938 = vst.msk [vmem:[%s1676_s5] sm:$0xff] %vm809_vm4, %v922_v20  ;;  %815 = vst.msk [vmem:[%s1675_s4 + $0x28] sm:$0xff] %vm809_vm4, %v798_v25 }
 0x273   : > { %v888_v27 = vpop.xlane.xlu1 %887  ;;  %v879_v28 = vpop.xlane.xlu0 %878 }
 0x274   : > { %v926_v29 = vadd.f32 %v888_v27, %v830_v21  ;;  %v923_v30 = vadd.f32 %v879_v28, %v827_v26  ;;  %v742_v27 = vld [vmem:[%s1675_s4 + $0x68] sm:$0xff]  ;;  %v743_v28 = vld [vmem:[%s1675_s4 + $0x70] sm:$0xff] }
 0x276   : > { %942 = vst.msk [vmem:[%s1676_s5 + $0x20] sm:$0xff] %vm809_vm4, %v926_v29  ;;  %939 = vst.msk [vmem:[%s1676_s5 + $0x8] sm:$0xff] %vm809_vm4, %v923_v30 }
 0x277   : > { %v750_v32 = vpop.xlane.xlu1 %749  ;;  %v891_v33 = vpop.xlane.xlu0 %890 }
 0x278   : > { %v794_v34 = vadd.f32 %v750_v32, %v730_v31  ;;  %v927_v35 = vadd.f32 %v891_v33, %v831_v19  ;;  %v839_v32 = vld [vmem:[%s1676_s5 + $0x68] sm:$0xff]  ;;  %v840_v33 = vld [vmem:[%s1676_s5 + $0x70] sm:$0xff] }
 0x27a   : > { %811 = vst.msk [vmem:[%s1675_s4 + $0x8] sm:$0xff] %vm809_vm4, %v794_v34  ;;  %943 = vst.msk [vmem:[%s1676_s5 + $0x28] sm:$0xff] %vm809_vm4, %v927_v35 }
 0x27b   : > { %v753_v38 = vpop.xlane.xlu0 %752  ;;  %v765_v39 = vpop.xlane.xlu1 %764 }
 0x27c   : > { %v795_v40 = vadd.f32 %v753_v38, %v731_v36  ;;  %v799_v41 = vadd.f32 %v765_v39, %v735_v37  ;;  %v744_v38 = vld [vmem:[%s1675_s4 + $0x78] sm:$0xff] }
 0x27e   : > { %812 = vst.msk [vmem:[%s1675_s4 + $0x10] sm:$0xff] %vm809_vm4, %v795_v40  ;;  %816 = vst.msk [vmem:[%s1675_s4 + $0x30] sm:$0xff] %vm809_vm4, %v799_v41  ;;  %v841_v41 = vld [vmem:[%s1676_s5 + $0x78] sm:$0xff] }
 0x27f   : > { %v756_v44 = vpop.xlane.xlu0 %755  ;;  %v882_v45 = vpop.xlane.xlu1 %881 }
 0x280   : > { %v796_v46 = vadd.f32 %v756_v44, %v732_v42  ;;  %v924_v47 = vadd.f32 %v882_v45, %v828_v43 }
 0x282   : > { %813 = vst.msk [vmem:[%s1675_s4 + $0x18] sm:$0xff] %vm809_vm4, %v796_v46  ;;  %940 = vst.msk [vmem:[%s1676_s5 + $0x10] sm:$0xff] %vm809_vm4, %v924_v47 }
 0x283   : > { %v768_v50 = vpop.xlane.xlu0 %767  ;;  %v894_v51 = vpop.xlane.xlu1 %893 }
 0x284   : > { %v800_v52 = vadd.f32 %v768_v50, %v736_v48  ;;  %v928_v53 = vadd.f32 %v894_v51, %v832_v49 }
 0x286   : > { %817 = vst.msk [vmem:[%s1675_s4 + $0x38] sm:$0xff] %vm809_vm4, %v800_v52  ;;  %944 = vst.msk [vmem:[%s1676_s5 + $0x30] sm:$0xff] %vm809_vm4, %v928_v53 }
 0x287   : > { %v885_v55 = vpop.xlane.xlu0 %884  ;;  %v771_v56 = vpop.xlane.xlu1 %770 }
 0x288   : > { %v925_v57 = vadd.f32 %v885_v55, %v829_v54  ;;  %v801_v58 = vadd.f32 %v771_v56, %v737_v4 }
 0x28a   : > { %941 = vst.msk [vmem:[%s1676_s5 + $0x18] sm:$0xff] %vm809_vm4, %v925_v57  ;;  %818 = vst.msk [vmem:[%s1675_s4 + $0x40] sm:$0xff] %vm809_vm4, %v801_v58 }
 0x28b   : > { %v897_v61 = vpop.xlane.xlu0 %896  ;;  %v900_v62 = vpop.xlane.xlu1 %899 }
 0x28c   : > { %v929_v63 = vadd.f32 %v897_v61, %v833_v59  ;;  %v930_v0 = vadd.f32 %v900_v62, %v834_v60 }
 0x28e   : > { %945 = vst.msk [vmem:[%s1676_s5 + $0x38] sm:$0xff] %vm809_vm4, %v929_v63  ;;  %946 = vst.msk [vmem:[%s1676_s5 + $0x40] sm:$0xff] %vm809_vm4, %v930_v0 }
 0x28f   : > { %v774_v3 = vpop.xlane.xlu0 %773  ;;  %v777_v5 = vpop.xlane.xlu1 %776 }
 0x290   : > { %v802_v6 = vadd.f32 %v774_v3, %v738_v1  ;;  %v803_v7 = vadd.f32 %v777_v5, %v739_v2 }
 0x292   : > { %819 = vst.msk [vmem:[%s1675_s4 + $0x48] sm:$0xff] %vm809_vm4, %v802_v6  ;;  %820 = vst.msk [vmem:[%s1675_s4 + $0x50] sm:$0xff] %vm809_vm4, %v803_v7 }
 0x293   : > { %v903_v10 = vpop.xlane.xlu0 %902  ;;  %v906_v11 = vpop.xlane.xlu1 %905 }
 0x294   : > { %v931_v12 = vadd.f32 %v903_v10, %v835_v8  ;;  %v932_v13 = vadd.f32 %v906_v11, %v836_v9 }
 0x296   : > { %947 = vst.msk [vmem:[%s1676_s5 + $0x48] sm:$0xff] %vm809_vm4, %v931_v12  ;;  %948 = vst.msk [vmem:[%s1676_s5 + $0x50] sm:$0xff] %vm809_vm4, %v932_v13 }
 0x297   : > { %v780_v16 = vpop.xlane.xlu0 %779  ;;  %v783_v17 = vpop.xlane.xlu1 %782 }
 0x298   : > { %v804_v18 = vadd.f32 %v780_v16, %v740_v14  ;;  %v805_v22 = vadd.f32 %v783_v17, %v741_v15 }
 0x29a   : > { %821 = vst.msk [vmem:[%s1675_s4 + $0x58] sm:$0xff] %vm809_vm4, %v804_v18  ;;  %822 = vst.msk [vmem:[%s1675_s4 + $0x60] sm:$0xff] %vm809_vm4, %v805_v22 }
 0x29b   : > { %v909_v20 = vpop.xlane.xlu0 %908  ;;  %v912_v25 = vpop.xlane.xlu1 %911 }
 0x29c   : > { %v933_v21 = vadd.f32 %v909_v20, %v837_v24  ;;  %v934_v26 = vadd.f32 %v912_v25, %v838_v23 }
 0x29e   : > { %949 = vst.msk [vmem:[%s1676_s5 + $0x58] sm:$0xff] %vm809_vm4, %v933_v21  ;;  %950 = vst.msk [vmem:[%s1676_s5 + $0x60] sm:$0xff] %vm809_vm4, %v934_v26 }
 0x29f   : > { %v786_v29 = vpop.xlane.xlu0 %785  ;;  %v789_v30 = vpop.xlane.xlu1 %788 }
 0x2a0   : > { %v806_v31 = vadd.f32 %v786_v29, %v742_v27  ;;  %v807_v19 = vadd.f32 %v789_v30, %v743_v28 }
 0x2a2   : > { %823 = vst.msk [vmem:[%s1675_s4 + $0x68] sm:$0xff] %vm809_vm4, %v806_v31  ;;  %824 = vst.msk [vmem:[%s1675_s4 + $0x70] sm:$0xff] %vm809_vm4, %v807_v19 }
 0x2a3   : > { %v915_v34 = vpop.xlane.xlu0 %914  ;;  %v918_v35 = vpop.xlane.xlu1 %917 }
 0x2a4   : > { %v935_v36 = vadd.f32 %v915_v34, %v839_v32  ;;  %v936_v37 = vadd.f32 %v918_v35, %v840_v33 }
 0x2a6   : > { %951 = vst.msk [vmem:[%s1676_s5 + $0x68] sm:$0xff] %vm809_vm4, %v935_v36  ;;  %952 = vst.msk [vmem:[%s1676_s5 + $0x70] sm:$0xff] %vm809_vm4, %v936_v37 }
 0x2a7   : > { %v792_v39 = vpop.xlane.xlu0 %791 }
 0x2a8   : > { %v808_v40 = vadd.f32 %v792_v39, %v744_v38 }
 0x2aa   : > { %825 = vst.msk [vmem:[%s1675_s4 + $0x78] sm:$0xff] %vm809_vm4, %v808_v40 }
 0x2ab   : > { %v921_v42 = vpop.xlane.xlu0 %920 }
 0x2ac   : > { %v937_v43 = vadd.f32 %v921_v42, %v841_v41 }
 0x2ae   : > { %953 = vst.msk [vmem:[%s1676_s5 + $0x78] sm:$0xff] %vm809_vm4, %v937_v43 }
 0x2af PF: > { %s16_s20 = sadd.s32 1, %s1163_s20   ;;  %s1677_s18 = smov %s1159_s19 }
 0x2b0   : > { %p13_p6 = scmp.ge.s32.totalorder %s16_s20, 4   ;;  %s1678_s19 = smov %s1680_s21 }
 0x2b2   :  { %15 = sbr.rel (!%p13_p6) target bundleno = 2 (0x2), region = 82 }

</bundles_post_ra>
